<compile_context>
chip_gen: v7x
topology: tpu7x:2x2x1
jax: 0.10.0
libtpu: 0.0.40
codegen_flags: <defaults>
</compile_context>

<pallas_src>
import jax
import jax.numpy as jnp
from jax.experimental import pallas as pl
from jax.experimental.pallas import tpu as pltpu

_LANE = 128


def _round_up(n, m):
    return ((n + m - 1) // m) * m


def _cdiv(a, b):
    return -(-a // b)


def _qnet_kernel(x_ref, w1_ref, b1_ref, w2_ref, b2_ref,
                 w3_ref, b3_ref, w4_ref, b4_ref, o_ref):
    # Activations cast to bf16 right before each dot (cheap MXU input); accumulator,
    # bias-add and ReLU stay in f32.
    x = x_ref[...].astype(jnp.bfloat16)

    h = jnp.dot(x, w1_ref[...], preferred_element_type=jnp.float32)
    h = jnp.maximum(h + b1_ref[...], 0.0)

    h = jnp.dot(h.astype(jnp.bfloat16), w2_ref[...], preferred_element_type=jnp.float32)
    h = jnp.maximum(h + b2_ref[...], 0.0)

    h = jnp.dot(h.astype(jnp.bfloat16), w3_ref[...], preferred_element_type=jnp.float32)
    h = jnp.maximum(h + b3_ref[...], 0.0)

    h = jnp.dot(h.astype(jnp.bfloat16), w4_ref[...], preferred_element_type=jnp.float32)
    o_ref[...] = (h + b4_ref[...]).astype(o_ref.dtype)


def _resident_spec(a):
    """Weight/bias spec: full array, constant index_map -> VMEM-resident across the
    whole grid; single-buffered (the block never changes, so double-buffering would
    only burn VMEM and one extra priming DMA)."""
    return pl.BlockSpec(a.shape, lambda i: (0,) * a.ndim,
                        pipeline_mode=pl.Buffered(1))


def qnet_forward(x, params, out_size, *, tile_b=1024, out_dtype=jnp.float32):
    """x: (B, input_size) float32.  params: bf16 transposed weights + f32 biases,
    last layer padded to a multiple of 128 columns.  Returns (B, out_size) out_dtype."""
    B, in_size = x.shape
    out_pad = params["w4"].shape[1]

    # Balanced batch tile: pick the number of tiles first, then size them evenly
    # (multiple of 8 = f32 sublane tile) so padding waste stays < 1 row-group per tile.
    n_tiles = max(1, _cdiv(B, tile_b))
    TB = _round_up(_cdiv(B, n_tiles), 8)
    Bp = n_tiles * TB
    if Bp != B:
        x = jnp.pad(x, ((0, Bp - B), (0, 0)))
    grid = (n_tiles,)

    weight_args = (params["w1"], params["b1"], params["w2"], params["b2"],
                   params["w3"], params["b3"], params["w4"], params["b4"])

    # TODO(synk): for the per-step RL loop (B~1..8) the ~232 KiB weight DMA dominates;
    # keep weights hot across calls via a cross-pallas_call prefetch (P10: SEMAPHORE +
    # VMEM outputs, has_side_effects=True) or batch many env states per call.
    out_padded = pl.pallas_call(
        _qnet_kernel,
        out_shape=jax.ShapeDtypeStruct((Bp, out_pad), out_dtype),
        grid=grid,
        in_specs=[pl.BlockSpec((TB, in_size), lambda i: (i, 0))]
                 + [_resident_spec(a) for a in weight_args],
        out_specs=pl.BlockSpec((TB, out_pad), lambda i: (i, 0)),
        compiler_params=pltpu.CompilerParams(
            # v7x: shard batch tiles across the 2 TensorCores.  If profiling shows a
            # single busy TC, switch this axis to pltpu.CORE_PARALLEL.
            dimension_semantics=("parallel",),
            # Explicit limit so v5e's 16 MiB scoped default never binds at large TB.
            vmem_limit_bytes=32 * 1024 * 1024,
        ),
    )(x, *weight_args)

    return out_padded[:B, :out_size]


def init_params(key, input_size, output_size):
    """Master f32 params matching nn.Linear default init, stored transposed (in, out)."""
    sizes = [(input_size, 256), (256, 256), (256, 128), (128, output_size)]
    params = {}
    for i, (fan_in, fan_out) in enumerate(sizes, start=1):
        key, kw, kb = jax.random.split(key, 3)
        bound = 1.0 / float(fan_in) ** 0.5
        params[f"w{i}"] = jax.random.uniform(
            kw, (fan_in, fan_out), jnp.float32, -bound, bound)
        params[f"b{i}"] = jax.random.uniform(
            kb, (1, fan_out), jnp.float32, -bound, bound)
    return params


def prepare_kernel_params(master):
    """bf16 weights, f32 biases; pad the final layer columns to a multiple of 128."""
    out_size = master["w4"].shape[1]
    out_pad = _round_up(max(out_size, _LANE), _LANE)
    kp = {}
    for i in range(1, 5):
        w, b = master[f"w{i}"], master[f"b{i}"]
        if i == 4 and out_pad != out_size:
            w = jnp.pad(w, ((0, 0), (0, out_pad - out_size)))
            b = jnp.pad(b, ((0, 0), (0, out_pad - out_size)))
        kp[f"w{i}"] = w.astype(jnp.bfloat16)
        kp[f"b{i}"] = b.astype(jnp.float32)
    return kp, out_size


def reference_forward(x, kp, out_size):
    """Pure-JAX reference using the same (bf16-rounded) weights, f32 math throughout."""
    w = lambda i: kp[f"w{i}"].astype(jnp.float32)
    b = lambda i: kp[f"b{i}"]
    h = jnp.maximum(x @ w(1) + b(1), 0.0)
    h = jnp.maximum(h @ w(2) + b(2), 0.0)
    h = jnp.maximum(h @ w(3) + b(3), 0.0)
    out = h @ w(4) + b(4)
    return out[:, :out_size]


if __name__ == "__main__":
    input_size, output_size, batch = 16, 4, 8

    key = jax.random.PRNGKey(0)
    key, kx = jax.random.split(key)
    master = init_params(key, input_size, output_size)
    kparams, out_size = prepare_kernel_params(master)
    x = jax.random.normal(kx, (batch, input_size), jnp.float32)

    # Tiny-batch (RL micro-batch) path, f32 output.
    out = jax.block_until_ready(qnet_forward(x, kparams, out_size))
    ref = reference_forward(x, kparams, out_size)
    assert out.shape == (batch, output_size)
    # bf16 activation casts inside the kernel vs f32 reference -> loosened tolerance.
    assert jnp.allclose(out, ref, atol=2e-2, rtol=2e-2), float(jnp.max(jnp.abs(out - ref)))

    # bf16 writeback path (halves padded-output HBM traffic for large-batch inference).
    out_bf16 = jax.block_until_ready(
        qnet_forward(x, kparams, out_size, out_dtype=jnp.bfloat16))
    assert jnp.allclose(out_bf16.astype(jnp.float32), ref, atol=5e-2, rtol=5e-2), \
        float(jnp.max(jnp.abs(out_bf16.astype(jnp.float32) - ref)))

    # Multi-tile path with a batch just over a tile boundary (balanced TB -> grid=(3,),
    # only 4 padded rows instead of ~50% waste).
    x2 = jax.random.normal(jax.random.PRNGKey(1), (260, input_size), jnp.float32)
    out2 = jax.block_until_ready(qnet_forward(x2, kparams, out_size, tile_b=128))
    ref2 = reference_forward(x2, kparams, out_size)
    assert out2.shape == (260, output_size)
    assert jnp.allclose(out2, ref2, atol=2e-2, rtol=2e-2), \
        float(jnp.max(jnp.abs(out2 - ref2)))

    print("KERNEL_OK")
</pallas_src>

<mosaic_0001>
module attributes {stable_mosaic.version = 11 : i64} {
  func.func @_qnet_kernel(%arg0: i32, %arg1: memref<8x16xf32, #tpu.memory_space<vmem>>, %arg2: memref<16x256xbf16, #tpu.memory_space<vmem>>, %arg3: memref<1x256xf32, #tpu.memory_space<vmem>>, %arg4: memref<256x256xbf16, #tpu.memory_space<vmem>>, %arg5: memref<1x256xf32, #tpu.memory_space<vmem>>, %arg6: memref<256x128xbf16, #tpu.memory_space<vmem>>, %arg7: memref<1x128xf32, #tpu.memory_space<vmem>>, %arg8: memref<128x128xbf16, #tpu.memory_space<vmem>>, %arg9: memref<1x128xf32, #tpu.memory_space<vmem>>, %arg10: memref<8x128xf32, #tpu.memory_space<vmem>>) attributes {dimension_semantics = [#tpu.dimension_semantics<parallel>], iteration_bounds = array<i64: 1>, scalar_prefetch = 0 : i64, scratch_operands = 0 : i64, tpu.core_type = #tpu.core_type<tc>, window_params = [{transform_indices = @transform_0, window_bounds = array<i64: 8, 16>}, {pipeline_mode = #tpu.pipeline_mode<synchronous>, transform_indices = @transform_1, window_bounds = array<i64: 16, 256>}, {pipeline_mode = #tpu.pipeline_mode<synchronous>, transform_indices = @transform_2, window_bounds = array<i64: 1, 256>}, {pipeline_mode = #tpu.pipeline_mode<synchronous>, transform_indices = @transform_3, window_bounds = array<i64: 256, 256>}, {pipeline_mode = #tpu.pipeline_mode<synchronous>, transform_indices = @transform_4, window_bounds = array<i64: 1, 256>}, {pipeline_mode = #tpu.pipeline_mode<synchronous>, transform_indices = @transform_5, window_bounds = array<i64: 256, 128>}, {pipeline_mode = #tpu.pipeline_mode<synchronous>, transform_indices = @transform_6, window_bounds = array<i64: 1, 128>}, {pipeline_mode = #tpu.pipeline_mode<synchronous>, transform_indices = @transform_7, window_bounds = array<i64: 128, 128>}, {pipeline_mode = #tpu.pipeline_mode<synchronous>, transform_indices = @transform_8, window_bounds = array<i64: 1, 128>}, {transform_indices = @transform_9, window_bounds = array<i64: 8, 128>}]} {
    %c0 = arith.constant 0 : index
    %c0_0 = arith.constant 0 : index
    %0 = vector.load %arg1[%c0, %c0_0] : memref<8x16xf32, #tpu.memory_space<vmem>>, vector<8x16xf32>
    %1 = arith.truncf %0 : vector<8x16xf32> to vector<8x16xbf16>
    %c0_1 = arith.constant 0 : index
    %c0_2 = arith.constant 0 : index
    %2 = vector.load %arg2[%c0_1, %c0_2] : memref<16x256xbf16, #tpu.memory_space<vmem>>, vector<16x256xbf16>
    %cst = arith.constant dense<0.000000e+00> : vector<8x256xf32>
    %3 = tpu.matmul %1, %2, %cst {dimension_numbers = #tpu.dot_dimension_numbers<[1], [0], [0], [1], [0, 0, 1, 1], [], []>} : vector<8x16xbf16>, vector<16x256xbf16>, vector<8x256xf32> -> vector<8x256xf32>
    %c0_3 = arith.constant 0 : index
    %c0_4 = arith.constant 0 : index
    %4 = vector.load %arg3[%c0_3, %c0_4] : memref<1x256xf32, #tpu.memory_space<vmem>>, vector<1x256xf32>
    %5 = vector.broadcast %4 : vector<1x256xf32> to vector<8x256xf32>
    %6 = arith.addf %3, %5 : vector<8x256xf32>
    %cst_5 = arith.constant 0.000000e+00 : f32
    %7 = vector.broadcast %cst_5 : f32 to vector<8x256xf32>
    %8 = arith.maximumf %6, %7 : vector<8x256xf32>
    %9 = arith.truncf %8 : vector<8x256xf32> to vector<8x256xbf16>
    %c0_6 = arith.constant 0 : index
    %c0_7 = arith.constant 0 : index
    %10 = vector.load %arg4[%c0_6, %c0_7] : memref<256x256xbf16, #tpu.memory_space<vmem>>, vector<256x256xbf16>
    %cst_8 = arith.constant dense<0.000000e+00> : vector<8x256xf32>
    %11 = tpu.matmul %9, %10, %cst_8 {dimension_numbers = #tpu.dot_dimension_numbers<[1], [0], [0], [1], [0, 0, 1, 1], [], []>} : vector<8x256xbf16>, vector<256x256xbf16>, vector<8x256xf32> -> vector<8x256xf32>
    %c0_9 = arith.constant 0 : index
    %c0_10 = arith.constant 0 : index
    %12 = vector.load %arg5[%c0_9, %c0_10] : memref<1x256xf32, #tpu.memory_space<vmem>>, vector<1x256xf32>
    %13 = vector.broadcast %12 : vector<1x256xf32> to vector<8x256xf32>
    %14 = arith.addf %11, %13 : vector<8x256xf32>
    %cst_11 = arith.constant 0.000000e+00 : f32
    %15 = vector.broadcast %cst_11 : f32 to vector<8x256xf32>
    %16 = arith.maximumf %14, %15 : vector<8x256xf32>
    %17 = arith.truncf %16 : vector<8x256xf32> to vector<8x256xbf16>
    %c0_12 = arith.constant 0 : index
    %c0_13 = arith.constant 0 : index
    %18 = vector.load %arg6[%c0_12, %c0_13] : memref<256x128xbf16, #tpu.memory_space<vmem>>, vector<256x128xbf16>
    %cst_14 = arith.constant dense<0.000000e+00> : vector<8x128xf32>
    %19 = tpu.matmul %17, %18, %cst_14 {dimension_numbers = #tpu.dot_dimension_numbers<[1], [0], [0], [1], [0, 0, 1, 1], [], []>} : vector<8x256xbf16>, vector<256x128xbf16>, vector<8x128xf32> -> vector<8x128xf32>
    %c0_15 = arith.constant 0 : index
    %c0_16 = arith.constant 0 : index
    %20 = vector.load %arg7[%c0_15, %c0_16] : memref<1x128xf32, #tpu.memory_space<vmem>>, vector<1x128xf32>
    %21 = vector.broadcast %20 : vector<1x128xf32> to vector<8x128xf32>
    %22 = arith.addf %19, %21 : vector<8x128xf32>
    %cst_17 = arith.constant 0.000000e+00 : f32
    %23 = vector.broadcast %cst_17 : f32 to vector<8x128xf32>
    %24 = arith.maximumf %22, %23 : vector<8x128xf32>
    %25 = arith.truncf %24 : vector<8x128xf32> to vector<8x128xbf16>
    %c0_18 = arith.constant 0 : index
    %c0_19 = arith.constant 0 : index
    %26 = vector.load %arg8[%c0_18, %c0_19] : memref<128x128xbf16, #tpu.memory_space<vmem>>, vector<128x128xbf16>
    %cst_20 = arith.constant dense<0.000000e+00> : vector<8x128xf32>
    %27 = tpu.matmul %25, %26, %cst_20 {dimension_numbers = #tpu.dot_dimension_numbers<[1], [0], [0], [1], [0, 0, 1, 1], [], []>} : vector<8x128xbf16>, vector<128x128xbf16>, vector<8x128xf32> -> vector<8x128xf32>
    %c0_21 = arith.constant 0 : index
    %c0_22 = arith.constant 0 : index
    %28 = vector.load %arg9[%c0_21, %c0_22] : memref<1x128xf32, #tpu.memory_space<vmem>>, vector<1x128xf32>
    %29 = vector.broadcast %28 : vector<1x128xf32> to vector<8x128xf32>
    %30 = arith.addf %27, %29 : vector<8x128xf32>
    %c0_23 = arith.constant 0 : index
    %c0_24 = arith.constant 0 : index
    %31 = vector.load %arg10[%c0_23, %c0_24] : memref<8x128xf32, #tpu.memory_space<vmem>>, vector<8x128xf32>
    tpu.vector_store %arg10[%c0_23, %c0_24], %30 {strides = array<i32>} : memref<8x128xf32, #tpu.memory_space<vmem>>, vector<8x128xf32>,
    return
  }
  func.func @transform_0(%arg0: i32) -> (i32, i32) {
    %c0_i32 = arith.constant 0 : i32
    %c0_i32_0 = arith.constant 0 : i32
    return %arg0, %c0_i32 : i32, i32
  }
  func.func @transform_1(%arg0: i32) -> (i32, i32) {
    %c0_i32 = arith.constant 0 : i32
    %c0_i32_0 = arith.constant 0 : i32
    %c0_i32_1 = arith.constant 0 : i32
    return %c0_i32, %c0_i32_0 : i32, i32
  }
  func.func @transform_2(%arg0: i32) -> (i32, i32) {
    %c0_i32 = arith.constant 0 : i32
    %c0_i32_0 = arith.constant 0 : i32
    %c0_i32_1 = arith.constant 0 : i32
    return %c0_i32, %c0_i32_0 : i32, i32
  }
  func.func @transform_3(%arg0: i32) -> (i32, i32) {
    %c0_i32 = arith.constant 0 : i32
    %c0_i32_0 = arith.constant 0 : i32
    %c0_i32_1 = arith.constant 0 : i32
    return %c0_i32, %c0_i32_0 : i32, i32
  }
  func.func @transform_4(%arg0: i32) -> (i32, i32) {
    %c0_i32 = arith.constant 0 : i32
    %c0_i32_0 = arith.constant 0 : i32
    %c0_i32_1 = arith.constant 0 : i32
    return %c0_i32, %c0_i32_0 : i32, i32
  }
  func.func @transform_5(%arg0: i32) -> (i32, i32) {
    %c0_i32 = arith.constant 0 : i32
    %c0_i32_0 = arith.constant 0 : i32
    %c0_i32_1 = arith.constant 0 : i32
    return %c0_i32, %c0_i32_0 : i32, i32
  }
  func.func @transform_6(%arg0: i32) -> (i32, i32) {
    %c0_i32 = arith.constant 0 : i32
    %c0_i32_0 = arith.constant 0 : i32
    %c0_i32_1 = arith.constant 0 : i32
    return %c0_i32, %c0_i32_0 : i32, i32
  }
  func.func @transform_7(%arg0: i32) -> (i32, i32) {
    %c0_i32 = arith.constant 0 : i32
    %c0_i32_0 = arith.constant 0 : i32
    %c0_i32_1 = arith.constant 0 : i32
    return %c0_i32, %c0_i32_0 : i32, i32
  }
  func.func @transform_8(%arg0: i32) -> (i32, i32) {
    %c0_i32 = arith.constant 0 : i32
    %c0_i32_0 = arith.constant 0 : i32
    %c0_i32_1 = arith.constant 0 : i32
    return %c0_i32, %c0_i32_0 : i32, i32
  }
  func.func @transform_9(%arg0: i32) -> (i32, i32) {
    %c0_i32 = arith.constant 0 : i32
    %c0_i32_0 = arith.constant 0 : i32
    return %arg0, %c0_i32 : i32, i32
  }
}

</mosaic_0001>

<bundles_post_ra>
// kernel: tpu_custom_call.1
= control target key start
LH: loop header
LB: loop body
LE: loop exit
PB: predicated region body
PF: predicated region fallthrough
CT: control target
= control target key end

     0   :  { %14 = vsyncpa [#allocation3], 0  ;;  %s1236_s0 = inlined_call_operand.hbm [shape: f32[8,16], index: 0, kind: input, shape index: {}]   ;;  %s1237_s1 = inlined_call_operand.hbm [shape: bf16[16,256], index: 1, kind: input, shape index: {}]   ;;  %s1238_s2 = inlined_call_operand.vmem [shape: f32[1,256], index: 2, kind: input, shape index: {}]   ;;  %s1239_s3 = inlined_call_operand.hbm [shape: bf16[256,256], index: 3, kind: input, shape index: {}]   ;;  %s1240_s4 = inlined_call_operand.vmem [shape: f32[1,256], index: 4, kind: input, shape index: {}]   ;;  %s1241_s5 = inlined_call_operand.hbm [shape: bf16[256,128], index: 5, kind: input, shape index: {}]   ;;  %s1242_s6 = inlined_call_operand.vmem [shape: f32[1,128], index: 6, kind: input, shape index: {}]   ;;  %s1243_s7 = inlined_call_operand.hbm [shape: bf16[128,128], index: 7, kind: input, shape index: {}]   ;;  %s1244_s8 = inlined_call_operand.vmem [shape: f32[1,128], index: 8, kind: input, shape index: {}]   ;;  %s1245_s9 = inlined_call_operand.hbm [shape: f32[8,128], index: 9, kind: output, shape index: {}]  }
   0x1   :  { %15 = vsyncpa [#allocation6], 0 }
   0x2   :  { %16 = vsyncpa [#allocation9], 0 }
   0x3   :  { %17 = vsyncpa [#allocation4], 0  ;;  %s1070_s30 = smov [#allocation5]   ;;  %s930_s13 = scalar_lea.hbm %s1237_s1, 256 }
   0x4   :  { %s33_s10 = sshll.u32 %s1070_s30, 4  ;;  %p931_p0 = scmp.ne.s32.totalorder %s1237_s1, %s930_s13  ;;  %s34_s10 = int_to_ptr.vmem [resolvable:$true] %s33_s10 }
   0x5   :  { %p934_p1 = scmp.lt.u32.totalorder %s930_s13, %s1237_s1 }
   0x7   :  { %p936_p2 = pnand %p934_p1, %p931_p0 }
   0x9   :  { %939 = shalt.err (!%p936_p2)
}
   0xa   :  { %s940_s18 = scalar_lea.vmem %s34_s10, 256  ;;  %p945_p4 = scmp.lt.s32.totalorder %s34_s10, %s34_s10 }
   0xb   :  { %p941_p3 = scmp.ne.s32.totalorder %s34_s10, %s940_s18  ;;  %p946_p5 = scmp.lt.s32.totalorder %s940_s18, %s940_s18 }
   0xd   :  { %p947_p6 = por %p946_p5, %p945_p4 }
   0xf   :  { %p948_p7 = pnand %p947_p6, %p941_p3 }
  0x11   :  { %951 = shalt.err (!%p948_p7)
}
  0x12   :  { %s1071_s19 = smov 128   ;;  %s1072_s20 = smov 8  }
  0x13   :  { %39 = dma.hbm_to_vmem [thread:$0]  %s1237_s1, 256, %s34_s10, [#allocation6], %s1071_s19, %s1071_s19, %s1072_s20  }
  0x14   :  { %s1073_s23 = smov [#allocation8]   ;;  %s952_s27 = scalar_lea.hbm %s1241_s5, 2048 }
  0x15   :  { %s61_s24 = sshll.u32 %s1073_s23, 4  ;;  %p953_p8 = scmp.ne.s32.totalorder %s1241_s5, %s952_s27  ;;  %s62_s24 = int_to_ptr.vmem [resolvable:$true] %s61_s24 }
  0x16   :  { %p956_p9 = scmp.lt.u32.totalorder %s952_s27, %s1241_s5 }
  0x18   :  { %p958_p10 = pnand %p956_p9, %p953_p8 }
  0x1a   :  { %961 = shalt.err (!%p958_p10)
}
  0x1b   :  { %s962_s12 = scalar_lea.vmem %s62_s24, 2048  ;;  %p967_p12 = scmp.lt.s32.totalorder %s62_s24, %s62_s24 }
  0x1c   :  { %p963_p11 = scmp.ne.s32.totalorder %s62_s24, %s962_s12  ;;  %p968_p13 = scmp.lt.s32.totalorder %s962_s12, %s962_s12 }
  0x1e   :  { %p969_p0 = por %p968_p13, %p967_p12 }
  0x20   :  { %p970_p1 = pnand %p969_p0, %p963_p11 }
  0x22   :  { %973 = shalt.err (!%p970_p1)
}
  0x23   :  { %s1074_s1 = smov 64   ;;  %s1075_s10 = smov 4  }
  0x24   :  { %67 = dma.hbm_to_vmem [thread:$0]  %s1241_s5, 2048, %s62_s24, [#allocation9], %s1074_s1, %s1074_s1, %s1075_s10  }
  0x25   :  { %s1076_s15 = smov [#allocation2]   ;;  %s1077_s17 = smov [#allocation7]  }
  0x26   :  { %s24_s16 = sshll.u32 %s1076_s15, 4  ;;  %s47_s18 = sshll.u32 %s1077_s17, 4  ;;  %s25_s16 = int_to_ptr.vmem [resolvable:$true] %s24_s16  ;;  %s1163_s18 = int_to_ptr.vmem [resolvable:$true] %s47_s18 }
  0x27   :  { %s974_s23 = scalar_lea.hbm %s1236_s0, 128 }
  0x28   :  { %p975_p2 = scmp.ne.s32.totalorder %s1236_s0, %s974_s23  ;;  %p978_p3 = scmp.lt.u32.totalorder %s974_s23, %s1236_s0 }
  0x2a   :  { %p980_p4 = pnand %p978_p3, %p975_p2 }
  0x2c   :  { %983 = shalt.err (!%p980_p4)
}
  0x2d   :  { %s984_s5 = scalar_lea.vmem %s25_s16, 128  ;;  %p989_p6 = scmp.lt.s32.totalorder %s25_s16, %s25_s16 }
  0x2e   :  { %p985_p5 = scmp.ne.s32.totalorder %s25_s16, %s984_s5  ;;  %p990_p7 = scmp.lt.s32.totalorder %s984_s5, %s984_s5 }
  0x30   :  { %p991_p8 = por %p990_p7, %p989_p6 }
  0x32   :  { %p992_p9 = pnand %p991_p8, %p985_p5 }
  0x34   :  { %995 = shalt.err (!%p992_p9)
}
  0x35   :  { %27 = dma.hbm_to_vmem [thread:$0]  %s1236_s0, 128, %s25_s16, [#allocation3]  }
  0x36   :  { %s996_s12 = scalar_lea.hbm %s1239_s3, 4096 }
  0x37   :  { %p997_p10 = scmp.ne.s32.totalorder %s1239_s3, %s996_s12  ;;  %p1000_p11 = scmp.lt.u32.totalorder %s996_s12, %s1239_s3 }
  0x39   :  { %p1002_p12 = pnand %p1000_p11, %p997_p10 }
  0x3b   :  { %1005 = shalt.err (!%p1002_p12)
}
  0x3c   :  { %s1006_s21 = scalar_lea.vmem %s1163_s18, 4096  ;;  %p1011_p0 = scmp.lt.s32.totalorder %s1163_s18, %s1163_s18 }
  0x3d   :  { %p1007_p13 = scmp.ne.s32.totalorder %s1163_s18, %s1006_s21  ;;  %p1012_p1 = scmp.lt.s32.totalorder %s1006_s21, %s1006_s21 }
  0x3f   :  { %p1013_p2 = por %p1012_p1, %p1011_p0 }
  0x41   :  { %p1014_p3 = pnand %p1013_p2, %p1007_p13 }
  0x43   :  { %1017 = shalt.err (!%p1014_p3)
}
  0x44   :  { %53 = dma.hbm_to_vmem [thread:$0]  %s1239_s3, 4096, %s1163_s18, [#allocation6], %s1071_s19, %s1071_s19, %s1072_s20  }
  0x45   :  { %s1078_s22 = smov [#allocation10]   ;;  %s1018_s27 = scalar_lea.hbm %s1243_s7, 1024 }
  0x46   :  { %s75_s23 = sshll.u32 %s1078_s22, 4  ;;  %p1019_p4 = scmp.ne.s32.totalorder %s1243_s7, %s1018_s27  ;;  %s76_s23 = int_to_ptr.vmem [resolvable:$true] %s75_s23 }
  0x47   :  { %p1022_p5 = scmp.lt.u32.totalorder %s1018_s27, %s1243_s7 }
  0x49   :  { %p1024_p6 = pnand %p1022_p5, %p1019_p4 }
  0x4b   :  { %1027 = shalt.err (!%p1024_p6)
}
  0x4c   :  { %s1028_s30 = scalar_lea.vmem %s76_s23, 1024  ;;  %p1033_p8 = scmp.lt.s32.totalorder %s76_s23, %s76_s23 }
  0x4d   :  { %p1029_p7 = scmp.ne.s32.totalorder %s76_s23, %s1028_s30  ;;  %p1034_p9 = scmp.lt.s32.totalorder %s1028_s30, %s1028_s30 }
  0x4f   :  { %p1035_p10 = por %p1034_p9, %p1033_p8 }
  0x51   :  { %p1036_p11 = pnand %p1035_p10, %p1029_p7 }
  0x53   :  { %1039 = shalt.err (!%p1036_p11)
}
  0x54   :  { %81 = dma.hbm_to_vmem [thread:$0]  %s1243_s7, 1024, %s76_s23, [#allocation9], %s1074_s1, %s1074_s1, %s1075_s10  }
  0x55   :  { %1062 = dma.done.wait [#allocation3], 128  }
  0x56   :  { %1063 = vsyncadd [#allocation3], 4294967168 }
  0x57   :  { %1064 = dma.done.wait [#allocation6], 4352  }
  0x58   :  { %1065 = vsyncadd [#allocation6], 4294962944 }
  0x59   :  { %1066 = dma.done.wait [#allocation9], 3072  }
  0x5a   :  { %1067 = vsyncadd [#allocation9], 4294964224  ;;  %v1079_v0 = vmov 0   ;;  %v855_v1 = vld [vmem:[#allocation5 + $0x4] ss:$8 sps:$4 sm:$0xff]   ;;  %v100_v3 = vld [vmem:[#allocation2] sm:$0xff]  ;;  %v106_v49 = vlaneseq }
  0x5b   :  { %162 = vmatprep.mubr.bf16.mxu0 %v1079_v0  ;;  %v857_v2 = vld [vmem:[#allocation5] ss:$8 sps:$4 sm:$0xff]   ;;  %130 = vmatprep.subr.bf16.mxu0 %v855_v1  ;;  %v101_v4 = vpack.c.bf16 %v100_v3, %v100_v3  ;;  %v858_v5 = vld [vmem:[#allocation7 + $0x4] ss:$8 sps:$4 sm:$0xff]   ;;  %v860_v6 = vld [vmem:[#allocation7] ss:$8 sps:$4 sm:$0xff]  }
  0x5c   :  { %131 = vmatpush1.bf16.msra.mxu0 %v857_v2  ;;  %vm126_vm0 = vcmask 130048   ;;  %v861_v7 = vld [vmem:[#allocation7 + $0x14] ss:$8 sps:$4 sm:$0xff]   ;;  %379 = vmatprep.subr.bf16.mxu1 %v858_v5  ;;  %v863_v8 = vld [vmem:[#allocation7 + $0x10] ss:$8 sps:$4 sm:$0xff]   ;;  %v906_v37 = vld [vmem:[#allocation8 + $0x40] sm:$0xff]  }
  0x5d   :  { %380 = vmatpush1.bf16.msra.mxu1 %v860_v6  ;;  %v864_v9 = vld [vmem:[#allocation7 + $0x24] ss:$8 sps:$4 sm:$0xff]   ;;  %v866_v10 = vld [vmem:[#allocation7 + $0x20] ss:$8 sps:$4 sm:$0xff]   ;;  %v867_v11 = vld [vmem:[#allocation7 + $0x34] ss:$8 sps:$4 sm:$0xff]   ;;  %791 = vmatprep.subr.bf16.mxu0 %v906_v37 }
  0x5e   :  { %381 = vmatprep.subr.bf16.mxu1 %v861_v7  ;;  %v869_v12 = vld [vmem:[#allocation7 + $0x30] ss:$8 sps:$4 sm:$0xff]   ;;  %v870_v13 = vld [vmem:[#allocation7 + $0x44] ss:$8 sps:$4 sm:$0xff]   ;;  %v872_v14 = vld [vmem:[#allocation7 + $0x40] ss:$8 sps:$4 sm:$0xff]  }
  0x5f   :  { %732 = vmatmul.mubr.msk.bf16.vlgmr.msra.gmra.mrb[0].mxu0 %vm126_vm0, %v101_v4  ;;  %v873_v15 = vld [vmem:[#allocation7 + $0x54] ss:$8 sps:$4 sm:$0xff]   ;;  %v875_v16 = vld [vmem:[#allocation7 + $0x50] ss:$8 sps:$4 sm:$0xff]   ;;  %v876_v17 = vld [vmem:[#allocation7 + $0x64] ss:$8 sps:$4 sm:$0xff]  }
  0x60   :  { %v878_v18 = vld [vmem:[#allocation7 + $0x60] ss:$8 sps:$4 sm:$0xff]   ;;  %v879_v19 = vld [vmem:[#allocation7 + $0x74] ss:$8 sps:$4 sm:$0xff]   ;;  %v881_v20 = vld [vmem:[#allocation7 + $0x70] ss:$8 sps:$4 sm:$0xff]  }
  0x61   :  { %382 = vmatpush1.bf16.msra.mxu1 %v863_v8  ;;  %v882_v21 = vld [vmem:[#allocation7 + $0x84] ss:$8 sps:$4 sm:$0xff]   ;;  %v884_v22 = vld [vmem:[#allocation7 + $0x80] ss:$8 sps:$4 sm:$0xff]   ;;  %v885_v23 = vld [vmem:[#allocation7 + $0x94] ss:$8 sps:$4 sm:$0xff]  }
  0x62   :  { %383 = vmatprep.subr.bf16.mxu1 %v864_v9  ;;  %v887_v24 = vld [vmem:[#allocation7 + $0x90] ss:$8 sps:$4 sm:$0xff]   ;;  %v888_v25 = vld [vmem:[#allocation7 + $0xa4] ss:$8 sps:$4 sm:$0xff]   ;;  %v890_v26 = vld [vmem:[#allocation7 + $0xa0] ss:$8 sps:$4 sm:$0xff]  }
  0x63   :  { %v891_v27 = vld [vmem:[#allocation7 + $0xb4] ss:$8 sps:$4 sm:$0xff]   ;;  %v893_v28 = vld [vmem:[#allocation7 + $0xb0] ss:$8 sps:$4 sm:$0xff]   ;;  %v894_v29 = vld [vmem:[#allocation7 + $0xc4] ss:$8 sps:$4 sm:$0xff]  }
  0x64   :  { %v896_v30 = vld [vmem:[#allocation7 + $0xc0] ss:$8 sps:$4 sm:$0xff]   ;;  %v897_v31 = vld [vmem:[#allocation7 + $0xd4] ss:$8 sps:$4 sm:$0xff]   ;;  %v899_v32 = vld [vmem:[#allocation7 + $0xd0] ss:$8 sps:$4 sm:$0xff]  }
  0x65   :  { %384 = vmatpush1.bf16.msra.mxu1 %v866_v10  ;;  %v900_v33 = vld [vmem:[#allocation7 + $0xe4] ss:$8 sps:$4 sm:$0xff]   ;;  %v902_v34 = vld [vmem:[#allocation7 + $0xe0] ss:$8 sps:$4 sm:$0xff]   ;;  %v903_v35 = vld [vmem:[#allocation7 + $0xf4] ss:$8 sps:$4 sm:$0xff]  }
  0x66   :  { %385 = vmatprep.subr.bf16.mxu1 %v867_v11  ;;  %v905_v36 = vld [vmem:[#allocation7 + $0xf0] ss:$8 sps:$4 sm:$0xff]   ;;  %v907_v38 = vld [vmem:[#allocation8] sm:$0xff]   ;;  %v908_v39 = vld [vmem:[#allocation8 + $0x48] sm:$0xff]   ;;  %v107_v50 = vshrl.u32 %v106_v49, 7  ;;  %v1080_v6 = vmov 0.0  }
  0x67   :  { %792 = vmatpush3.bf16.msra.mxu0 %v907_v38  ;;  %v909_v40 = vld [vmem:[#allocation8 + $0x8] sm:$0xff]   ;;  %v910_v41 = vld [vmem:[#allocation8 + $0x50] sm:$0xff]   ;;  %v912_v43 = vld [vmem:[#allocation8 + $0x58] sm:$0xff]   ;;  %vm1081_vm1 = vmmov 0   ;;  %s1082_s12 = smov [#allocation11]  }
  0x68   :  { %793 = vmatprep.subr.bf16.mxu0 %v908_v39  ;;  %v911_v42 = vld [vmem:[#allocation8 + $0x10] sm:$0xff]   ;;  %v913_v44 = vld [vmem:[#allocation8 + $0x18] sm:$0xff]   ;;  %v914_v45 = vld [vmem:[#allocation8 + $0x60] sm:$0xff]   ;;  %v108_v51 = vsub.s32 0, %v107_v50  ;;  %v112_v53 = vsub.s32 1, %v107_v50  ;;  %s719_s13 = sshll.u32 %s1082_s12, 4  ;;  %s720_s13 = int_to_ptr.vmem [resolvable:$true] %s719_s13 }
  0x69   :  { %386 = vmatpush1.bf16.msra.mxu1 %v869_v12  ;;  %v915_v46 = vld [vmem:[#allocation8 + $0x20] sm:$0xff]   ;;  %v916_v47 = vld [vmem:[#allocation8 + $0x68] sm:$0xff]   ;;  %v918_v2 = vld [vmem:[#allocation8 + $0x70] sm:$0xff]   ;;  %p1045_p13 = scmp.lt.s32.totalorder %s720_s13, %s720_s13 }
  0x6a   :  { %387 = vmatprep.subr.bf16.mxu1 %v870_v13  ;;  %v917_v48 = vld [vmem:[#allocation8 + $0x28] sm:$0xff]   ;;  %v919_v3 = vld [vmem:[#allocation8 + $0x30] sm:$0xff]   ;;  %v920_v4 = vld [vmem:[#allocation8 + $0x78] sm:$0xff]  }
  0x6b   :  { %794 = vmatpush3.bf16.msra.mxu0 %v909_v40  ;;  %v104_v52 = vld [vmem:[%s1238_s2] sm:$0x3]  ;;  %v921_v5 = vld [vmem:[#allocation8 + $0x38] sm:$0xff]  }
  0x6c   :  { %795 = vmatprep.subr.bf16.mxu0 %v910_v41  ;;  %v109_v54 = vrot.slane %v104_v52, %v108_v51  ;;  %v113_v55 = vrot.slane %v104_v52, %v112_v53  ;;  %v207_v7 = vld [vmem:[%s1240_s4] sm:$0x3] }
  0x6d   :  { %388 = vmatpush1.bf16.msra.mxu1 %v872_v14  ;;  %v212_v8 = vrot.slane %v207_v7, %v108_v51  ;;  %v216_v9 = vrot.slane %v207_v7, %v112_v53  ;;  %v782_v37 = vld [vmem:[%s1244_s8] ss:$0 sm:$0xff] }
  0x6e   :  { %389 = vmatprep.subr.bf16.mxu1 %v873_v15 }
  0x6f   :  { %796 = vmatpush3.bf16.msra.mxu0 %v911_v42 }
  0x70   :  { %797 = vmatprep.subr.bf16.mxu0 %v912_v43 }
  0x71   :  { %390 = vmatpush1.bf16.msra.mxu1 %v875_v16 }
  0x72   :  { %391 = vmatprep.subr.bf16.mxu1 %v876_v17 }
  0x73   :  { %798 = vmatpush3.bf16.msra.mxu0 %v913_v44 }
  0x74   :  { %799 = vmatprep.subr.bf16.mxu0 %v914_v45 }
  0x75   :  { %392 = vmatpush1.bf16.msra.mxu1 %v878_v18 }
  0x76   :  { %393 = vmatprep.subr.bf16.mxu1 %v879_v19  ;;  %v922_v19 = vld [vmem:[#allocation10] sm:$0xff]  }
  0x77   :  { %800 = vmatpush3.bf16.msra.mxu0 %v915_v46 }
  0x78   :  { %801 = vmatprep.subr.bf16.mxu0 %v916_v47 }
  0x79   :  { %394 = vmatpush1.bf16.msra.mxu1 %v881_v20 }
  0x7a   :  { %395 = vmatprep.subr.bf16.mxu1 %v882_v21  ;;  %v923_v21 = vld [vmem:[#allocation10 + $0x8] sm:$0xff]  }
  0x7b   :  { %802 = vmatpush3.bf16.msra.mxu0 %v917_v48 }
  0x7c   :  { %803 = vmatprep.subr.bf16.mxu0 %v918_v2 }
  0x7d   :  { %396 = vmatpush1.bf16.msra.mxu1 %v884_v22  ;;  %v924_v22 = vld [vmem:[#allocation10 + $0x10] sm:$0xff]  }
  0x7e   :  { %397 = vmatprep.subr.bf16.mxu1 %v885_v23  ;;  %v925_v23 = vld [vmem:[#allocation10 + $0x18] sm:$0xff]  }
  0x7f   :  { %804 = vmatpush3.bf16.msra.mxu0 %v919_v3 }
  0x80   :  { %805 = vmatprep.subr.bf16.mxu0 %v920_v4 }
  0x81   :  { %398 = vmatpush1.bf16.msra.mxu1 %v887_v24  ;;  %v926_v24 = vld [vmem:[#allocation10 + $0x20] sm:$0xff]  }
  0x82   :  { %399 = vmatprep.subr.bf16.mxu1 %v888_v25  ;;  %v927_v25 = vld [vmem:[#allocation10 + $0x28] sm:$0xff]  }
  0x83   :  { %806 = vmatpush3.bf16.msra.mxu0 %v921_v5 }
  0x84   :  { %822 = vmatprep.subr.bf16.mxu0 %v1080_v6 }
  0x85   :  { %400 = vmatpush1.bf16.msra.mxu1 %v890_v26  ;;  %v928_v26 = vld [vmem:[#allocation10 + $0x30] sm:$0xff]  }
  0x86   :  { %401 = vmatprep.subr.bf16.mxu1 %v891_v27  ;;  %v929_v27 = vld [vmem:[#allocation10 + $0x38] sm:$0xff]  }
  0x89   :  { %402 = vmatpush1.bf16.msra.mxu1 %v893_v28 }
  0x8a   :  { %403 = vmatprep.subr.bf16.mxu1 %v894_v29  ;;  %v765_v29 = vld [vmem:[%s1242_s6] ss:$0 sm:$0xff]  ;;  %s1040_s6 = scalar_lea.vmem %s720_s13, 128 }
  0x8b   :  { %p1041_p12 = scmp.ne.s32.totalorder %s720_s13, %s1040_s6  ;;  %p1046_p0 = scmp.lt.s32.totalorder %s1040_s6, %s1040_s6 }
  0x8d   :  { %404 = vmatpush1.bf16.msra.mxu1 %v896_v30  ;;  %p1047_p1 = por %p1046_p0, %p1045_p13 }
  0x8e   :  { %405 = vmatprep.subr.bf16.mxu1 %v897_v31 }
  0x8f   :  { %p1048_p2 = pnand %p1047_p1, %p1041_p12 }
  0x91   :  { %406 = vmatpush1.bf16.msra.mxu1 %v899_v32 }
  0x92   :  { %407 = vmatprep.subr.bf16.mxu1 %v900_v33 }
  0x95   :  { %408 = vmatpush1.bf16.msra.mxu1 %v902_v34 }
  0x96   :  { %409 = vmatprep.subr.bf16.mxu1 %v903_v35 }
  0x99   :  { %410 = vmatpush1.bf16.msra.mxu1 %v905_v36 }
 0x132   :  { %v164_v56 = vpop.f32.mrb[0].mxu0 }
 0x133   :  { %v165_v57 = vadd.f32 %v164_v56, %v109_v54  ;;  %v166_v58 = vpop.f32.mrb[1].mxu0 }
 0x134   :  { %v167_v59 = vadd.f32 %v166_v58, %v113_v55  ;;  %v168_v60 = vpop.f32.mrb[2].mxu0 }
 0x135   :  { %v171_v61 = vmax.f32 %v165_v57, 0.0  ;;  %v169_v62 = vpop.f32.mrb[3].mxu0 }
 0x136   :  { %v172_v63 = vmax.f32 %v167_v59, 0.0 }
 0x137   :  { %v173_v1 = vpack.c.bf16 %v171_v61, %v171_v61 }
 0x138   :  { %v174_v0 = vpack.c.bf16 %v172_v63, %v172_v63 }
 0x13a   :  { %411 = vmatprep.mubr.bf16.mxu1 %v174_v0 }
 0x13b   :  { %412 = vmatmul.mubr.bf16.vlgmr.msra.gmra.mrb[0].mxu1 %v173_v1 }
 0x20e   :  { %v413_v10 = vpop.f32.mrb[0].mxu1 }
 0x20f   :  { %v414_v11 = vadd.f32 %v413_v10, %v212_v8  ;;  %v415_v12 = vpop.f32.mrb[1].mxu1 }
 0x210   :  { %v416_v13 = vadd.f32 %v415_v12, %v216_v9  ;;  %v417_v14 = vpop.f32.mrb[2].mxu1 }
 0x211   :  { %v420_v15 = vmax.f32 %v414_v11, 0.0  ;;  %v418_v16 = vpop.f32.mrb[3].mxu1 }
 0x212   :  { %v421_v17 = vmax.f32 %v416_v13, 0.0 }
 0x213   :  { %v422_v20 = vpack.c.bf16 %v420_v15, %v420_v15 }
 0x214   :  { %v423_v18 = vpack.c.bf16 %v421_v17, %v421_v17 }
 0x216   :  { %591 = vmatprep.mubr.bf16.mxu0 %v423_v18 }
 0x217   :  { %592 = vmatmul.mubr.bf16.vlgmr.msra.gmra.mrb[4].mxu0 %v422_v20 }
 0x218   :  { %823 = vmatpush3.bf16.msra.mxu0 %v922_v19  ;;  %838 = vmatprep.mubr.msk.bf16.mxu0 %vm1081_vm1, %v1080_v6 }
 0x219   :  { %824 = vmatprep.subr.bf16.mxu0 %v1080_v6 }
 0x21c   :  { %825 = vmatpush3.bf16.msra.mxu0 %v923_v21 }
 0x21d   :  { %826 = vmatprep.subr.bf16.mxu0 %v1080_v6 }
 0x220   :  { %827 = vmatpush3.bf16.msra.mxu0 %v924_v22 }
 0x221   :  { %828 = vmatprep.subr.bf16.mxu0 %v1080_v6 }
 0x224   :  { %829 = vmatpush3.bf16.msra.mxu0 %v925_v23 }
 0x225   :  { %830 = vmatprep.subr.bf16.mxu0 %v1080_v6 }
 0x228   :  { %831 = vmatpush3.bf16.msra.mxu0 %v926_v24 }
 0x229   :  { %832 = vmatprep.subr.bf16.mxu0 %v1080_v6 }
 0x22c   :  { %833 = vmatpush3.bf16.msra.mxu0 %v927_v25 }
 0x22d   :  { %834 = vmatprep.subr.bf16.mxu0 %v1080_v6 }
 0x230   :  { %835 = vmatpush3.bf16.msra.mxu0 %v928_v26 }
 0x231   :  { %836 = vmatprep.subr.bf16.mxu0 %v1080_v6 }
 0x234   :  { %837 = vmatpush3.bf16.msra.mxu0 %v929_v27 }
 0x2ea   :  { %v807_v28 = vpop.f32.mrb[4].mxu0 }
 0x2eb   :  { %v808_v30 = vpop.f32.mrb[5].mxu0 }
 0x2ec   :  { %v809_v31 = vadd.f32 %v808_v30, %v807_v28  ;;  %v810_v32 = vpop.f32.mrb[6].mxu0 }
 0x2ed   :  { %v811_v33 = vpop.f32.mrb[7].mxu0 }
 0x2ee   :  { %v594_v34 = vadd.f32 %v809_v31, %v765_v29 }
 0x2f0   :  { %v599_v35 = vmax.f32 %v594_v34, 0.0 }
 0x2f2   :  { %v600_v36 = vpack.c.bf16 %v599_v35, %v599_v35 }
 0x2f4   :  { %839 = vmatmul.mubr.bf16.vlgmr.msra.gmra.mrb[8].mxu0 %v600_v36 }
 0x3c7   :  { %v706_v38 = vpop.f32.mrb[8].mxu0 }
 0x3c8   :  { %v707_v39 = vadd.f32 %v782_v37, %v706_v38  ;;  %v840_v40 = vpop.f32.mrb[9].mxu0 }
 0x3c9   :  { %v709_v41 = vpop.f32.mrb[10].mxu0 }
 0x3ca   :  { %712 = vst [vmem:[#allocation11] sm:$0xff] %v707_v39  ;;  %v841_v42 = vpop.f32.mrb[11].mxu0 }
 0x3cb   :  { %1051 = shalt.err (!%p1048_p2)
}
 0x3cc   :  { %s1052_s8 = scalar_lea.hbm %s1245_s9, 128 }
 0x3cd   :  { %p1053_p3 = scmp.ne.s32.totalorder %s1245_s9, %s1052_s8  ;;  %p1056_p4 = scmp.lt.u32.totalorder %s1052_s8, %s1245_s9 }
 0x3cf   :  { %p1058_p5 = pnand %p1056_p4, %p1053_p3 }
 0x3d1   :  { %1061 = shalt.err (!%p1058_p5)
}
 0x3d2   :  { %722 = dma.vmem_to_hbm [thread:$0]  %s720_s13, 128, %s1245_s9, [#allocation4]  }
 0x3d3   :  { %1068 = dma.done.wait [#allocation4], 128  }
 0x3d4   :  { %1069 = vsyncadd [#allocation4], 4294967168 }
 0x3d5   :  { %726 = vsyncpa [#allocation3], 1 }
 0x3d6   :  { %727 = vsyncpa [#allocation6], 1 }
 0x3d7   :  { %728 = vsyncpa [#allocation9], 1 }
 0x3d8   :  { %729 = vsyncpa [#allocation4], 1 }

</bundles_post_ra>
